<compile_context>
chip_gen: v6e
topology: v6e:2x2x1
jax: 0.10.0
libtpu: 0.0.40
codegen_flags: <defaults>
</compile_context>

<pallas_src>
import jax
import jax.numpy as jnp
from jax.experimental import pallas as pl
from jax.experimental.pallas import tpu as pltpu

EPS = 1e-5
LANE = 128
# Set to jnp.bfloat16 on v6e/v7x for higher MXU throughput at large Cin/Cout.
MXU_INPUT_DTYPE = jnp.float32


def _round_up(x, m):
    return (x + m - 1) // m * m


def _make_phase1_kernel(H, W, M_total, eps):
    """Conv (per image) + one-pass per-channel sum/sumsq -> folded BN scale/shift."""
    HW = H * W

    def kernel(x_ref, w_ref, g_ref, b_ref, scale_ref, shift_ref, sum_sc, sq_sc):
        n = pl.program_id(0)

        @pl.when(n == 0)
        def _init():
            sum_sc[...] = jnp.zeros_like(sum_sc)
            sq_sc[...] = jnp.zeros_like(sq_sc)

        # Conv for this image: three H-shifted (HW, 3*Cin) x (3*Cin, CP) MXU dots.
        acc = jnp.dot(x_ref[pl.ds(0, HW), :], w_ref[0],
                      preferred_element_type=jnp.float32)
        acc = acc + jnp.dot(x_ref[pl.ds(W, HW), :], w_ref[1],
                            preferred_element_type=jnp.float32)
        acc = acc + jnp.dot(x_ref[pl.ds(2 * W, HW), :], w_ref[2],
                            preferred_element_type=jnp.float32)

        # single-pass stats accumulation (per output channel)
        sum_sc[...] += jnp.sum(acc, axis=0, keepdims=True)
        sq_sc[...] += jnp.sum(acc * acc, axis=0, keepdims=True)

        @pl.when(n == pl.num_programs(0) - 1)
        def _finalize():
            inv_m = 1.0 / M_total
            mean = sum_sc[...] * inv_m
            var = sq_sc[...] * inv_m - mean * mean        # biased variance
            inv = jax.lax.rsqrt(var + eps)
            scale = g_ref[...] * inv
            shift = b_ref[...] - mean * scale
            scale_ref[...] = scale
            shift_ref[...] = shift

    return kernel


def _make_phase2_kernel(H, W):
    """Recompute conv tile, apply folded BN scale/shift + ReLU (lane-dense store)."""
    HW = H * W

    def kernel(x_ref, w_ref, scale_ref, shift_ref, o_ref):
        acc = jnp.dot(x_ref[pl.ds(0, HW), :], w_ref[0],
                      preferred_element_type=jnp.float32)
        acc = acc + jnp.dot(x_ref[pl.ds(W, HW), :], w_ref[1],
                            preferred_element_type=jnp.float32)
        acc = acc + jnp.dot(x_ref[pl.ds(2 * W, HW), :], w_ref[2],
                            preferred_element_type=jnp.float32)
        y = acc * scale_ref[...] + shift_ref[...]
        o_ref[...] = jnp.maximum(y, 0.0).astype(o_ref.dtype)

    return kernel


def conv_block_forward(x_nchw, w_oihw, bias, gamma, beta):
    """Forward of Conv_block. x_nchw: (N, Cin, H, W) f32 -> (N, Cout, H, W) f32.

    `bias` is accepted for interface parity with nn.Conv2d but unused: under
    training-mode BatchNorm the per-channel conv bias is cancelled exactly by
    the mean subtraction.
    """
    del bias
    N, Cin, H, W = x_nchw.shape
    Cout = w_oihw.shape[0]
    HW = H * W
    M = N * HW
    K1 = 3 * Cin
    CP = _round_up(Cout, LANE)            # lane-dense padded channel count

    # ---- glue (XLA): NCHW -> NHWC, spatial pad=1, pack the 3 W-direction taps
    #      into the channel dim (3x instead of the previous 9x full im2col). ----
    # TODO(synk): in a real NHWC pipeline the entry/exit transposes disappear.
    x_nhwc = jnp.transpose(x_nchw, (0, 2, 3, 1))
    x_pad = jnp.pad(x_nhwc, ((0, 0), (1, 1), (1, 1), (0, 0)))
    xw = jnp.concatenate([x_pad[:, :, dx:dx + W, :] for dx in range(3)], axis=-1)
    x2d = xw.reshape(N * (H + 2) * W, K1).astype(MXU_INPUT_DTYPE)

    # weight (Cout, Cin, 3, 3) -> (ky, kx, Cin, Cout) -> (3, 3*Cin, CP), zero-padded
    w_t = jnp.transpose(w_oihw, (2, 3, 1, 0)).reshape(3, K1, Cout)
    w3 = jnp.pad(w_t, ((0, 0), (0, 0), (0, CP - Cout))).astype(MXU_INPUT_DTYPE)

    gamma_p = jnp.pad(gamma.reshape(1, Cout), ((0, 0), (0, CP - Cout)))
    beta_p = jnp.pad(beta.reshape(1, Cout), ((0, 0), (0, CP - Cout)))

    img_rows = (H + 2) * W                # per-image block rows in x2d

    x_spec = pl.BlockSpec((img_rows, K1), lambda n: (n, 0))
    w_spec = pl.BlockSpec((3, K1, CP), lambda n: (0, 0, 0))
    vec_spec = pl.BlockSpec((1, CP), lambda n: (0, 0))

    # -------- phase 1: conv + global BN stats -> folded (scale, shift) --------
    scale, shift = pl.pallas_call(
        _make_phase1_kernel(H, W, float(M), EPS),
        out_shape=(jax.ShapeDtypeStruct((1, CP), jnp.float32),
                   jax.ShapeDtypeStruct((1, CP), jnp.float32)),
        grid=(N,),
        in_specs=[x_spec, w_spec, vec_spec, vec_spec],
        out_specs=(vec_spec, vec_spec),
        scratch_shapes=[pltpu.VMEM((1, CP), jnp.float32),
                        pltpu.VMEM((1, CP), jnp.float32)],
        compiler_params=pltpu.CompilerParams(
            dimension_semantics=("arbitrary",),
            vmem_limit_bytes=32 * 1024 * 1024),
    )(x2d, w3, gamma_p, beta_p)

    # -------- phase 2: recompute conv tile, apply scale/shift + ReLU --------
    out_flat = pl.pallas_call(
        _make_phase2_kernel(H, W),
        out_shape=jax.ShapeDtypeStruct((M, CP), x_nchw.dtype),
        grid=(N,),
        in_specs=[x_spec, w_spec, vec_spec, vec_spec],
        out_specs=pl.BlockSpec((HW, CP), lambda n: (n, 0)),
        compiler_params=pltpu.CompilerParams(
            dimension_semantics=("parallel",),
            vmem_limit_bytes=32 * 1024 * 1024),
    )(x2d, w3, scale, shift)

    # (M, CP) -> slice padded channels -> (N, H, W, Cout) -> NCHW
    out = out_flat[:, :Cout].reshape(N, H, W, Cout)
    return jnp.transpose(out, (0, 3, 1, 2))


def _reference(x_nchw, w_oihw, bias, gamma, beta):
    """Pure-JAX reference (matches the PyTorch module in training mode)."""
    y = jax.lax.conv_general_dilated(
        x_nchw, w_oihw, window_strides=(1, 1), padding=((1, 1), (1, 1)),
        dimension_numbers=("NCHW", "OIHW", "NCHW"))
    y = y + bias.reshape(1, -1, 1, 1)
    mean = jnp.mean(y, axis=(0, 2, 3), keepdims=True)
    var = jnp.mean((y - mean) ** 2, axis=(0, 2, 3), keepdims=True)
    y = (y - mean) * jax.lax.rsqrt(var + EPS)
    y = y * gamma.reshape(1, -1, 1, 1) + beta.reshape(1, -1, 1, 1)
    return jnp.maximum(y, 0.0)


if __name__ == "__main__":
    # Small shapes consistent with the module: N=2, Cin=4, Cout=8, H=W=16
    N, Cin, Cout, H, W = 2, 4, 8, 16, 16

    key = jax.random.PRNGKey(0)
    kx, kw, kb = jax.random.split(key, 3)

    x = jax.random.normal(kx, (N, Cin, H, W), dtype=jnp.float32)

    # Deterministic parameter init (PyTorch-like: uniform(+-1/sqrt(fan_in)))
    fan_in = Cin * 3 * 3
    bound = 1.0 / jnp.sqrt(jnp.float32(fan_in))
    w = jax.random.uniform(kw, (Cout, Cin, 3, 3), jnp.float32, -bound, bound)
    b = jax.random.uniform(kb, (Cout,), jnp.float32, -bound, bound)
    gamma = jnp.ones((Cout,), jnp.float32)   # BatchNorm2d default weight
    beta = jnp.zeros((Cout,), jnp.float32)   # BatchNorm2d default bias

    out = conv_block_forward(x, w, b, gamma, beta)
    out = jax.block_until_ready(out)

    ref = _reference(x, w, b, gamma, beta)
    assert out.shape == (N, Cout, H, W)
    assert jnp.allclose(out, ref, atol=1e-4, rtol=1e-4), \
        f"max abs err {jnp.max(jnp.abs(out - ref))}"

    print("KERNEL_OK")
</pallas_src>

<mosaic_0001>
module attributes {stable_mosaic.version = 11 : i64} {
  func.func @kernel(%arg0: i32, %arg1: memref<288x12xf32, #tpu.memory_space<vmem>>, %arg2: memref<3x12x128xf32, #tpu.memory_space<vmem>>, %arg3: memref<1x128xf32, #tpu.memory_space<vmem>>, %arg4: memref<1x128xf32, #tpu.memory_space<vmem>>, %arg5: memref<1x128xf32, #tpu.memory_space<vmem>>, %arg6: memref<1x128xf32, #tpu.memory_space<vmem>>, %arg7: memref<1x128xf32, #tpu.memory_space<vmem>>, %arg8: memref<1x128xf32, #tpu.memory_space<vmem>>) attributes {dimension_semantics = [#tpu.dimension_semantics<arbitrary>], iteration_bounds = array<i64: 2>, scalar_prefetch = 0 : i64, scratch_operands = 2 : i64, tpu.core_type = #tpu.core_type<tc>, window_params = [{transform_indices = @transform_0, window_bounds = array<i64: 288, 12>}, {pipeline_mode = #tpu.pipeline_mode<synchronous>, transform_indices = @transform_1, window_bounds = array<i64: 3, 12, 128>}, {pipeline_mode = #tpu.pipeline_mode<synchronous>, transform_indices = @transform_2, window_bounds = array<i64: 1, 128>}, {pipeline_mode = #tpu.pipeline_mode<synchronous>, transform_indices = @transform_3, window_bounds = array<i64: 1, 128>}, {pipeline_mode = #tpu.pipeline_mode<synchronous>, transform_indices = @transform_4, window_bounds = array<i64: 1, 128>}, {pipeline_mode = #tpu.pipeline_mode<synchronous>, transform_indices = @transform_5, window_bounds = array<i64: 1, 128>}]} {
    %c0_i32 = arith.constant 0 : i32
    %0 = arith.cmpi eq, %arg0, %c0_i32 : i32
    %1 = arith.extui %0 : i1 to i32
    %c0_i32_0 = arith.constant 0 : i32
    %2 = arith.cmpi ne, %1, %c0_i32_0 : i32
    scf.if %2 {
      %cst_24 = arith.constant 0.000000e+00 : f32
      %31 = vector.broadcast %cst_24 : f32 to vector<1x128xf32>
      %c0_25 = arith.constant 0 : index
      %c0_26 = arith.constant 0 : index
      %32 = vector.load %arg7[%c0_25, %c0_26] : memref<1x128xf32, #tpu.memory_space<vmem>>, vector<1x128xf32>
      tpu.vector_store %arg7[%c0_25, %c0_26], %31 {strides = array<i32>} : memref<1x128xf32, #tpu.memory_space<vmem>>, vector<1x128xf32>,
      %cst_27 = arith.constant 0.000000e+00 : f32
      %33 = vector.broadcast %cst_27 : f32 to vector<1x128xf32>
      %c0_28 = arith.constant 0 : index
      %c0_29 = arith.constant 0 : index
      %34 = vector.load %arg8[%c0_28, %c0_29] : memref<1x128xf32, #tpu.memory_space<vmem>>, vector<1x128xf32>
      tpu.vector_store %arg8[%c0_28, %c0_29], %33 {strides = array<i32>} : memref<1x128xf32, #tpu.memory_space<vmem>>, vector<1x128xf32>,
    } else {
    }
    %c0 = arith.constant 0 : index
    %c0_1 = arith.constant 0 : index
    %3 = vector.load %arg1[%c0, %c0_1] : memref<288x12xf32, #tpu.memory_space<vmem>>, vector<256x12xf32>
    %c0_2 = arith.constant 0 : index
    %c0_3 = arith.constant 0 : index
    %c0_4 = arith.constant 0 : index
    %4 = vector.load %arg2[%c0_2, %c0_3, %c0_4] : memref<3x12x128xf32, #tpu.memory_space<vmem>>, vector<1x12x128xf32>
    %5 = vector.shape_cast %4 : vector<1x12x128xf32> to vector<12x128xf32>
    %cst = arith.constant dense<0.000000e+00> : vector<256x128xf32>
    %6 = tpu.matmul %3, %5, %cst {dimension_numbers = #tpu.dot_dimension_numbers<[1], [0], [0], [1], [0, 0, 1, 1], [], []>} : vector<256x12xf32>, vector<12x128xf32>, vector<256x128xf32> -> vector<256x128xf32>
    %c16 = arith.constant 16 : index
    %c0_5 = arith.constant 0 : index
    %7 = vector.load %arg1[%c16, %c0_5] : memref<288x12xf32, #tpu.memory_space<vmem>>, vector<256x12xf32>
    %c1 = arith.constant 1 : index
    %c0_6 = arith.constant 0 : index
    %c0_7 = arith.constant 0 : index
    %8 = vector.load %arg2[%c1, %c0_6, %c0_7] : memref<3x12x128xf32, #tpu.memory_space<vmem>>, vector<1x12x128xf32>
    %9 = vector.shape_cast %8 : vector<1x12x128xf32> to vector<12x128xf32>
    %cst_8 = arith.constant dense<0.000000e+00> : vector<256x128xf32>
    %10 = tpu.matmul %7, %9, %cst_8 {dimension_numbers = #tpu.dot_dimension_numbers<[1], [0], [0], [1], [0, 0, 1, 1], [], []>} : vector<256x12xf32>, vector<12x128xf32>, vector<256x128xf32> -> vector<256x128xf32>
    %11 = arith.addf %6, %10 : vector<256x128xf32>
    %c32 = arith.constant 32 : index
    %c0_9 = arith.constant 0 : index
    %12 = vector.load %arg1[%c32, %c0_9] : memref<288x12xf32, #tpu.memory_space<vmem>>, vector<256x12xf32>
    %c2 = arith.constant 2 : index
    %c0_10 = arith.constant 0 : index
    %c0_11 = arith.constant 0 : index
    %13 = vector.load %arg2[%c2, %c0_10, %c0_11] : memref<3x12x128xf32, #tpu.memory_space<vmem>>, vector<1x12x128xf32>
    %14 = vector.shape_cast %13 : vector<1x12x128xf32> to vector<12x128xf32>
    %cst_12 = arith.constant dense<0.000000e+00> : vector<256x128xf32>
    %15 = tpu.matmul %12, %14, %cst_12 {dimension_numbers = #tpu.dot_dimension_numbers<[1], [0], [0], [1], [0, 0, 1, 1], [], []>} : vector<256x12xf32>, vector<12x128xf32>, vector<256x128xf32> -> vector<256x128xf32>
    %16 = arith.addf %11, %15 : vector<256x128xf32>
    %c0_13 = arith.constant 0 : index
    %c0_14 = arith.constant 0 : index
    %17 = vector.load %arg7[%c0_13, %c0_14] : memref<1x128xf32, #tpu.memory_space<vmem>>, vector<1x128xf32>
    %cst_15 = arith.constant dense<0.000000e+00> : vector<128xf32>
    %18 = vector.multi_reduction <add>, %16, %cst_15 [0] : vector<256x128xf32> to vector<128xf32>
    %19 = vector.shape_cast %18 : vector<128xf32> to vector<1x128xf32>
    %20 = arith.addf %17, %19 : vector<1x128xf32>
    %c0_16 = arith.constant 0 : index
    %c0_17 = arith.constant 0 : index
    %21 = vector.load %arg7[%c0_16, %c0_17] : memref<1x128xf32, #tpu.memory_space<vmem>>, vector<1x128xf32>
    tpu.vector_store %arg7[%c0_16, %c0_17], %20 {strides = array<i32>} : memref<1x128xf32, #tpu.memory_space<vmem>>, vector<1x128xf32>,
    %c0_18 = arith.constant 0 : index
    %c0_19 = arith.constant 0 : index
    %22 = vector.load %arg8[%c0_18, %c0_19] : memref<1x128xf32, #tpu.memory_space<vmem>>, vector<1x128xf32>
    %23 = arith.mulf %16, %16 : vector<256x128xf32>
    %cst_20 = arith.constant dense<0.000000e+00> : vector<128xf32>
    %24 = vector.multi_reduction <add>, %23, %cst_20 [0] : vector<256x128xf32> to vector<128xf32>
    %25 = vector.shape_cast %24 : vector<128xf32> to vector<1x128xf32>
    %26 = arith.addf %22, %25 : vector<1x128xf32>
    %c0_21 = arith.constant 0 : index
    %c0_22 = arith.constant 0 : index
    %27 = vector.load %arg8[%c0_21, %c0_22] : memref<1x128xf32, #tpu.memory_space<vmem>>, vector<1x128xf32>
    tpu.vector_store %arg8[%c0_21, %c0_22], %26 {strides = array<i32>} : memref<1x128xf32, #tpu.memory_space<vmem>>, vector<1x128xf32>,
    %c1_i32 = arith.constant 1 : i32
    %28 = arith.cmpi eq, %arg0, %c1_i32 : i32
    %29 = arith.extui %28 : i1 to i32
    %c0_i32_23 = arith.constant 0 : i32
    %30 = arith.cmpi ne, %29, %c0_i32_23 : i32
    scf.if %30 {
      %c0_24 = arith.constant 0 : index
      %c0_25 = arith.constant 0 : index
      %31 = vector.load %arg7[%c0_24, %c0_25] : memref<1x128xf32, #tpu.memory_space<vmem>>, vector<1x128xf32>
      %cst_26 = arith.constant 0.001953125 : f32
      %32 = vector.broadcast %cst_26 : f32 to vector<1x128xf32>
      %33 = arith.mulf %31, %32 : vector<1x128xf32>
      %c0_27 = arith.constant 0 : index
      %c0_28 = arith.constant 0 : index
      %34 = vector.load %arg8[%c0_27, %c0_28] : memref<1x128xf32, #tpu.memory_space<vmem>>, vector<1x128xf32>
      %cst_29 = arith.constant 0.001953125 : f32
      %35 = vector.broadcast %cst_29 : f32 to vector<1x128xf32>
      %36 = arith.mulf %34, %35 : vector<1x128xf32>
      %37 = arith.mulf %33, %33 : vector<1x128xf32>
      %38 = arith.subf %36, %37 : vector<1x128xf32>
      %cst_30 = arith.constant 9.99999974E-6 : f32
      %39 = vector.broadcast %cst_30 : f32 to vector<1x128xf32>
      %40 = arith.addf %38, %39 : vector<1x128xf32>
      %41 = math.rsqrt %40 : vector<1x128xf32>
      %c0_31 = arith.constant 0 : index
      %c0_32 = arith.constant 0 : index
      %42 = vector.load %arg3[%c0_31, %c0_32] : memref<1x128xf32, #tpu.memory_space<vmem>>, vector<1x128xf32>
      %43 = arith.mulf %42, %41 : vector<1x128xf32>
      %c0_33 = arith.constant 0 : index
      %c0_34 = arith.constant 0 : index
      %44 = vector.load %arg4[%c0_33, %c0_34] : memref<1x128xf32, #tpu.memory_space<vmem>>, vector<1x128xf32>
      %45 = arith.mulf %33, %43 : vector<1x128xf32>
      %46 = arith.subf %44, %45 : vector<1x128xf32>
      %c0_35 = arith.constant 0 : index
      %c0_36 = arith.constant 0 : index
      %47 = vector.load %arg5[%c0_35, %c0_36] : memref<1x128xf32, #tpu.memory_space<vmem>>, vector<1x128xf32>
      tpu.vector_store %arg5[%c0_35, %c0_36], %43 {strides = array<i32>} : memref<1x128xf32, #tpu.memory_space<vmem>>, vector<1x128xf32>,
      %c0_37 = arith.constant 0 : index
      %c0_38 = arith.constant 0 : index
      %48 = vector.load %arg6[%c0_37, %c0_38] : memref<1x128xf32, #tpu.memory_space<vmem>>, vector<1x128xf32>
      tpu.vector_store %arg6[%c0_37, %c0_38], %46 {strides = array<i32>} : memref<1x128xf32, #tpu.memory_space<vmem>>, vector<1x128xf32>,
    } else {
    }
    return
  }
  func.func @transform_0(%arg0: i32) -> (i32, i32) {
    %c0_i32 = arith.constant 0 : i32
    %c0_i32_0 = arith.constant 0 : i32
    return %arg0, %c0_i32 : i32, i32
  }
  func.func @transform_1(%arg0: i32) -> (i32, i32, i32) {
    %c0_i32 = arith.constant 0 : i32
    %c0_i32_0 = arith.constant 0 : i32
    %c0_i32_1 = arith.constant 0 : i32
    %c0_i32_2 = arith.constant 0 : i32
    return %c0_i32, %c0_i32_0, %c0_i32_1 : i32, i32, i32
  }
  func.func @transform_2(%arg0: i32) -> (i32, i32) {
    %c0_i32 = arith.constant 0 : i32
    %c0_i32_0 = arith.constant 0 : i32
    %c0_i32_1 = arith.constant 0 : i32
    return %c0_i32, %c0_i32_0 : i32, i32
  }
  func.func @transform_3(%arg0: i32) -> (i32, i32) {
    %c0_i32 = arith.constant 0 : i32
    %c0_i32_0 = arith.constant 0 : i32
    %c0_i32_1 = arith.constant 0 : i32
    return %c0_i32, %c0_i32_0 : i32, i32
  }
  func.func @transform_4(%arg0: i32) -> (i32, i32) {
    %c0_i32 = arith.constant 0 : i32
    %c0_i32_0 = arith.constant 0 : i32
    %c0_i32_1 = arith.constant 0 : i32
    return %c0_i32, %c0_i32_0 : i32, i32
  }
  func.func @transform_5(%arg0: i32) -> (i32, i32) {
    %c0_i32 = arith.constant 0 : i32
    %c0_i32_0 = arith.constant 0 : i32
    %c0_i32_1 = arith.constant 0 : i32
    return %c0_i32, %c0_i32_0 : i32, i32
  }
}

</mosaic_0001>

<bundles_post_ra>
// kernel: tpu_custom_call.1
= control target key start
LH: loop header
LB: loop body
LE: loop exit
PB: predicated region body
PF: predicated region fallthrough
CT: control target
= control target key end

     0   :  { %11 = vsyncpa [#allocation5], 0  ;;  %s2288_s0 = inlined_call_operand.vmem [shape: f32[576,12], index: 0, kind: input, shape index: {}]   ;;  %s2289_s1 = inlined_call_operand.vmem [shape: f32[3,12,128], index: 1, kind: input, shape index: {}]   ;;  %s2290_s2 = inlined_call_operand.vmem [shape: f32[1,128], index: 2, kind: input, shape index: {}]   ;;  %s2291_s3 = inlined_call_operand.vmem [shape: f32[1,128], index: 3, kind: input, shape index: {}]   ;;  %s2292_s4 = inlined_call_operand.hbm [shape: f32[1,128], index: 4, kind: output, shape index: {0}]   ;;  %s2293_s5 = inlined_call_operand.hbm [shape: f32[1,128], index: 5, kind: output, shape index: {1}]  }
   0x1   :  { %12 = vsyncpa [#allocation7], 0  ;;  %s1907_s18 = smov 0  }
   0x2 LB: > { %s1913_s19 = sadd.s32 4294967295, %s1872_s18   ;;  %p1410_p0 = scmp.ge.s32.totalorder %s1872_s18, 1  ;;  %s1872_s18 = sphi %s1907_s18, %s18_s18  }
   0x3   : > { %p183_p1 = scmp.lt.s32.totalorder %s1872_s18, 3 }
   0x5   : > { %p184_p2 = pnand %p1410_p0, %p183_p1 }
   0x6   : > { %s206_s20 = smul.u32 (!%p184_p2), 36, %s1913_s19  ;;  %p1412_p4 = scmp.ne.s32.totalorder (!%p184_p2), %s1913_s19, 0 }
   0x7   : > { %187 = sbr.rel (%p184_p2) target bundleno = 399 (0x18f), region = 36 }
   0x8   : > { %p207_p3 = scmp.lt.s32.totalorder (!%p184_p2), %s206_s20, 71 }
   0xc   : > { %s2295_s20 = smov (!%p207_p3, %s206_s20), 71  ;;  %215 = sbr.rel (%p1412_p4) target bundleno = 19 (0x13), region = 40 }
   0xd   : > { %s1411_s21 = sshll.u32 %s2295_s20, 3 }
   0xe   : > { %s1921_s24 = scalar_lea.vmem %s2288_s0, %s1411_s21 }
  0x11   : > { %v1874_v0 = vmov 0.0  }
  0x12   : > { %216 = vst [vmem:[#allocation2] sm:$0x1] %v1874_v0  ;;  %217 = vst [vmem:[#allocation3] sm:$0x1] %v1874_v0 }
  0x13 PF: > { %v1414_v1 = vld [vmem:[%s2289_s1 + $0x18] sm:$0xf]  ;;  %vm354_vm0 = vcmask 1043456   ;;  %v1413_v2 = vld [vmem:[%s2289_s1 + $0x10] sm:$0xff]  ;;  %vm257_vm1 = vcmask 97280   ;;  %v1957_v9 = vld [vmem:[%s1921_s24 + $0xa0] sm:$0xff] }
  0x14   : > { %1781 = vmatprep.subr.msk.mxu1 %vm354_vm0, %v1414_v1  ;;  %1625 = vmatprep.subr.msk.mxu0 %vm354_vm0, %v1414_v1  ;;  %v1933_v3 = vld [vmem:[%s1921_s24 + $0x90] sm:$0xff]  ;;  %v1941_v5 = vld [vmem:[%s1921_s24 + $0x98] sm:$0xff]  ;;  %v251_v6 = vld [vmem:[%s2289_s1 + $0x8] sm:$0xf]  ;;  %p1516_p5 = scmp.ne.s32.totalorder %s1913_s19, 1 }
  0x15   : > { %1783 = vmatpush3.msk.msra.mxu1 %vm354_vm0, %v1414_v1  ;;  %1626 = vmatpush3.msk.msra.mxu0 %vm354_vm0, %v1414_v1  ;;  %v1938_v4 = vld [vmem:[%s1921_s24 + $0x10] sm:$0xff]  ;;  %v1949_v7 = vld [vmem:[%s1921_s24 + $0x18] sm:$0xff]  ;;  %v1482_v8 = vld [vmem:[%s2289_s1 + $0x28] sm:$0xf] }
  0x16   : > { %1782 = vmatprep.subr.mxu1 %v1413_v2  ;;  %1627 = vmatprep.subr.mxu0 %v1413_v2  ;;  %v1963_v10 = vld [vmem:[%s1921_s24 + $0x20] sm:$0xff]  ;;  %v1969_v11 = vld [vmem:[%s1921_s24 + $0xa8] sm:$0xff]  ;;  %v1981_v14 = vld [vmem:[%s1921_s24 + $0xb0] sm:$0xff] }
  0x17   : > { %1784 = vmatpush3.msra.mxu1 %v1413_v2  ;;  %1653 = vmatprep.mubr.msk.f32.mxu1 %vm257_vm1, %v1933_v3  ;;  %v250_v12 = vld [vmem:[%s2289_s1] sm:$0xff]  ;;  %v1978_v13 = vld [vmem:[%s1921_s24 + $0x28] sm:$0xff]  ;;  %v1987_v15 = vld [vmem:[%s1921_s24 + $0x30] sm:$0xff] }
  0x18   : > { %1628 = vmatpush3.msra.mxu0 %v1413_v2  ;;  %1629 = vmatprep.mubr.msk.f32.mxu0 %vm257_vm1, %v1938_v4  ;;  %v1481_v16 = vld [vmem:[%s2289_s1 + $0x20] sm:$0xff]  ;;  %v1999_v17 = vld [vmem:[%s1921_s24 + $0xb8] sm:$0xff]  ;;  %v2014_v21 = vld [vmem:[%s1921_s24 + $0xc8] sm:$0xff] }
  0x19   : > { %1654 = vmatmul.mubr.msk.f32.vlgmr.msra.gmra.mxu1 %vm257_vm1, %v1941_v5  ;;  %1677 = vmatprep.subr.msk.mxu1 %vm354_vm0, %v251_v6  ;;  %v225_v18 = vld [vmem:[%s1921_s24 + $0x38] sm:$0xff]  ;;  %v2005_v19 = vld [vmem:[%s1921_s24 + $0xc0] sm:$0xff]  ;;  %v227_v22 = vld [vmem:[%s1921_s24 + $0x48] sm:$0xff] }
  0x1a   : > { %1630 = vmatmul.mubr.msk.f32.vlgmr.msra.gmra.mxu0 %vm257_vm1, %v1949_v7  ;;  %1678 = vmatpush3.msk.msra.mxu1 %vm354_vm0, %v251_v6  ;;  %v226_v20 = vld [vmem:[%s1921_s24 + $0x40] sm:$0xff]  ;;  %v2019_v23 = vld [vmem:[%s1921_s24 + $0xd0] sm:$0xff]  ;;  %v2028_v25 = vld [vmem:[%s1921_s24 + $0xd8] sm:$0xff] }
  0x1b   : > { %1729 = vmatprep.subr.msk.mxu0 %vm354_vm0, %v1482_v8  ;;  %1656 = vmatprep.mubr.msk.f32.mxu1 %vm257_vm1, %v1957_v9  ;;  %v228_v24 = vld [vmem:[%s1921_s24 + $0x50] sm:$0xff]  ;;  %v229_v26 = vld [vmem:[%s1921_s24 + $0x58] sm:$0xff]  ;;  %v2033_v27 = vld [vmem:[%s1921_s24 + $0xe0] sm:$0xff] }
  0x1c   : > { %1730 = vmatpush3.msk.msra.mxu0 %vm354_vm0, %v1482_v8  ;;  %1632 = vmatprep.mubr.msk.f32.mxu0 %vm257_vm1, %v1963_v10  ;;  %v230_v28 = vld [vmem:[%s1921_s24 + $0x60] sm:$0xff]  ;;  %v2042_v29 = vld [vmem:[%s1921_s24 + $0xe8] sm:$0xff]  ;;  %v2047_v31 = vld [vmem:[%s1921_s24 + $0xf0] sm:$0xff] }
  0x1d   : > { %1657 = vmatmul.mubr.msk.f32.gmra.mxu1 %vm257_vm1, %v1969_v11  ;;  %1679 = vmatprep.subr.mxu1 %v250_v12  ;;  %v231_v30 = vld [vmem:[%s1921_s24 + $0x68] sm:$0xff]  ;;  %v232_v32 = vld [vmem:[%s1921_s24 + $0x70] sm:$0xff]  ;;  %v2056_v33 = vld [vmem:[%s1921_s24 + $0xf8] sm:$0xff] }
  0x1e   : > { %1633 = vmatmul.mubr.msk.f32.gmra.mxu0 %vm257_vm1, %v1978_v13  ;;  %1659 = vmatprep.mubr.msk.f32.mxu1 %vm257_vm1, %v1981_v14  ;;  %v233_v34 = vld [vmem:[%s1921_s24 + $0x78] sm:$0xff]  ;;  %v2061_v35 = vld [vmem:[%s1921_s24 + $0x100] sm:$0xff]  ;;  %v2070_v37 = vld [vmem:[%s1921_s24 + $0x108] sm:$0xff] }
  0x1f   : > { %1635 = vmatprep.mubr.msk.f32.mxu0 %vm257_vm1, %v1987_v15  ;;  %1680 = vmatpush3.msra.mxu1 %v250_v12  ;;  %v234_v36 = vld [vmem:[%s1921_s24 + $0x80] sm:$0xff]  ;;  %v235_v38 = vld [vmem:[%s1921_s24 + $0x88] sm:$0xff]  ;;  %v847_v41 = vld [vmem:[%s1921_s24 + $0x110] sm:$0xff] }
  0x20   : > { %1731 = vmatprep.subr.mxu0 %v1481_v16  ;;  %v218_v39 = vld [vmem:[%s1921_s24] sm:$0xff]  ;;  %v219_v40 = vld [vmem:[%s1921_s24 + $0x8] sm:$0xff]  ;;  %v848_v42 = vld [vmem:[%s1921_s24 + $0x118] sm:$0xff] }
  0x21   : > { %1660 = vmatmul.mubr.msk.f32.gmra.mxu1 %vm257_vm1, %v1999_v17  ;;  %1732 = vmatpush3.msra.mxu0 %v1481_v16 }
  0x22   : > { %1636 = vmatmul.mubr.msk.f32.gmra.mxu0 %vm257_vm1, %v225_v18  ;;  %1662 = vmatprep.mubr.msk.f32.mxu1 %vm257_vm1, %v2005_v19 }
  0x23   : > { %1638 = vmatprep.mubr.msk.f32.mxu0 %vm257_vm1, %v226_v20 }
  0x25   : > { %1663 = vmatmul.mubr.msk.f32.gmra.mxu1 %vm257_vm1, %v2014_v21 }
  0x26   : > { %1639 = vmatmul.mubr.msk.f32.gmra.mxu0 %vm257_vm1, %v227_v22  ;;  %1665 = vmatprep.mubr.msk.f32.mxu1 %vm257_vm1, %v2019_v23 }
  0x27   : > { %1641 = vmatprep.mubr.msk.f32.mxu0 %vm257_vm1, %v228_v24 }
  0x29   : > { %1666 = vmatmul.mubr.msk.f32.gmra.mxu1 %vm257_vm1, %v2028_v25 }
  0x2a   : > { %1642 = vmatmul.mubr.msk.f32.gmra.mxu0 %vm257_vm1, %v229_v26  ;;  %1668 = vmatprep.mubr.msk.f32.mxu1 %vm257_vm1, %v2033_v27 }
  0x2b   : > { %1644 = vmatprep.mubr.msk.f32.mxu0 %vm257_vm1, %v230_v28 }
  0x2d   : > { %1669 = vmatmul.mubr.msk.f32.gmra.mxu1 %vm257_vm1, %v2042_v29 }
  0x2e   : > { %1645 = vmatmul.mubr.msk.f32.gmra.mxu0 %vm257_vm1, %v231_v30  ;;  %1671 = vmatprep.mubr.msk.f32.mxu1 %vm257_vm1, %v2047_v31 }
  0x2f   : > { %1647 = vmatprep.mubr.msk.f32.mxu0 %vm257_vm1, %v232_v32 }
  0x31   : > { %1672 = vmatmul.mubr.msk.f32.gmra.mxu1 %vm257_vm1, %v2056_v33 }
  0x32   : > { %1648 = vmatmul.mubr.msk.f32.gmra.mxu0 %vm257_vm1, %v233_v34  ;;  %1674 = vmatprep.mubr.msk.f32.mxu1 %vm257_vm1, %v2061_v35 }
  0x33   : > { %1650 = vmatprep.mubr.msk.f32.mxu0 %vm257_vm1, %v234_v36 }
  0x35   : > { %1675 = vmatmul.mubr.msk.f32.gmra.mxu1 %vm257_vm1, %v2070_v37 }
  0x36   : > { %1651 = vmatmul.mubr.msk.f32.gmra.mxu0 %vm257_vm1, %v235_v38  ;;  %1681 = vmatprep.mubr.msk.f32.mxu1 %vm257_vm1, %v218_v39 }
  0x37   : > { %1733 = vmatprep.mubr.msk.f32.mxu0 %vm257_vm1, %v1963_v10 }
  0x39   : > { %1682 = vmatmul.mubr.msk.f32.vlgmr.msra.gmra.mxu1 %vm257_vm1, %v219_v40 }
  0x3a   : > { %1734 = vmatmul.mubr.msk.f32.vlgmr.msra.gmra.mxu0 %vm257_vm1, %v1978_v13  ;;  %1684 = vmatprep.mubr.msk.f32.mxu1 %vm257_vm1, %v1938_v4 }
  0x3b   : > { %1736 = vmatprep.mubr.msk.f32.mxu0 %vm257_vm1, %v1987_v15 }
  0x3d   : > { %1685 = vmatmul.mubr.msk.f32.gmra.mxu1 %vm257_vm1, %v1949_v7 }
  0x3e   : > { %1737 = vmatmul.mubr.msk.f32.gmra.mxu0 %vm257_vm1, %v225_v18  ;;  %1687 = vmatprep.mubr.msk.f32.mxu1 %vm257_vm1, %v1963_v10 }
  0x3f   : > { %1739 = vmatprep.mubr.msk.f32.mxu0 %vm257_vm1, %v226_v20 }
  0x41   : > { %1688 = vmatmul.mubr.msk.f32.gmra.mxu1 %vm257_vm1, %v1978_v13 }
  0x42   : > { %1740 = vmatmul.mubr.msk.f32.gmra.mxu0 %vm257_vm1, %v227_v22  ;;  %1690 = vmatprep.mubr.msk.f32.mxu1 %vm257_vm1, %v1987_v15 }
  0x43   : > { %1742 = vmatprep.mubr.msk.f32.mxu0 %vm257_vm1, %v228_v24 }
  0x45   : > { %1691 = vmatmul.mubr.msk.f32.gmra.mxu1 %vm257_vm1, %v225_v18 }
  0x46   : > { %1743 = vmatmul.mubr.msk.f32.gmra.mxu0 %vm257_vm1, %v229_v26  ;;  %1693 = vmatprep.mubr.msk.f32.mxu1 %vm257_vm1, %v226_v20 }
  0x47   : > { %1745 = vmatprep.mubr.msk.f32.mxu0 %vm257_vm1, %v230_v28 }
  0x49   : > { %1694 = vmatmul.mubr.msk.f32.gmra.mxu1 %vm257_vm1, %v227_v22 }
  0x4a   : > { %1746 = vmatmul.mubr.msk.f32.gmra.mxu0 %vm257_vm1, %v231_v30  ;;  %1696 = vmatprep.mubr.msk.f32.mxu1 %vm257_vm1, %v228_v24 }
  0x4b   : > { %1748 = vmatprep.mubr.msk.f32.mxu0 %vm257_vm1, %v232_v32 }
  0x4d   : > { %1697 = vmatmul.mubr.msk.f32.gmra.mxu1 %vm257_vm1, %v229_v26 }
  0x4e   : > { %1749 = vmatmul.mubr.msk.f32.gmra.mxu0 %vm257_vm1, %v233_v34  ;;  %1699 = vmatprep.mubr.msk.f32.mxu1 %vm257_vm1, %v230_v28 }
  0x4f   : > { %1751 = vmatprep.mubr.msk.f32.mxu0 %vm257_vm1, %v234_v36 }
  0x51   : > { %1700 = vmatmul.mubr.msk.f32.gmra.mxu1 %vm257_vm1, %v231_v30 }
  0x52   : > { %1752 = vmatmul.mubr.msk.f32.gmra.mxu0 %vm257_vm1, %v235_v38  ;;  %1702 = vmatprep.mubr.msk.f32.mxu1 %vm257_vm1, %v232_v32 }
  0x53   : > { %1754 = vmatprep.mubr.msk.f32.mxu0 %vm257_vm1, %v1933_v3 }
  0x55   : > { %1703 = vmatmul.mubr.msk.f32.gmra.mxu1 %vm257_vm1, %v233_v34 }
  0x56   : > { %1755 = vmatmul.mubr.msk.f32.gmra.mxu0 %vm257_vm1, %v1941_v5  ;;  %1705 = vmatprep.mubr.msk.f32.mxu1 %vm257_vm1, %v234_v36 }
  0x57   : > { %1757 = vmatprep.mubr.msk.f32.mxu0 %vm257_vm1, %v1957_v9 }
  0x59   : > { %1706 = vmatmul.mubr.msk.f32.gmra.mxu1 %vm257_vm1, %v235_v38 }
  0x5a   : > { %1758 = vmatmul.mubr.msk.f32.gmra.mxu0 %vm257_vm1, %v1969_v11  ;;  %1708 = vmatprep.mubr.msk.f32.mxu1 %vm257_vm1, %v1933_v3 }
  0x5b   : > { %1760 = vmatprep.mubr.msk.f32.mxu0 %vm257_vm1, %v1981_v14 }
  0x5d   : > { %1709 = vmatmul.mubr.msk.f32.gmra.mxu1 %vm257_vm1, %v1941_v5 }
  0x5e   : > { %1761 = vmatmul.mubr.msk.f32.gmra.mxu0 %vm257_vm1, %v1999_v17  ;;  %1711 = vmatprep.mubr.msk.f32.mxu1 %vm257_vm1, %v1957_v9 }
  0x5f   : > { %1763 = vmatprep.mubr.msk.f32.mxu0 %vm257_vm1, %v2005_v19 }
  0x61   : > { %1712 = vmatmul.mubr.msk.f32.gmra.mxu1 %vm257_vm1, %v1969_v11 }
  0x62   : > { %1764 = vmatmul.mubr.msk.f32.gmra.mxu0 %vm257_vm1, %v2014_v21  ;;  %1714 = vmatprep.mubr.msk.f32.mxu1 %vm257_vm1, %v1981_v14 }
  0x63   : > { %1766 = vmatprep.mubr.msk.f32.mxu0 %vm257_vm1, %v2019_v23 }
  0x65   : > { %1715 = vmatmul.mubr.msk.f32.gmra.mxu1 %vm257_vm1, %v1999_v17 }
  0x66   : > { %1767 = vmatmul.mubr.msk.f32.gmra.mxu0 %vm257_vm1, %v2028_v25  ;;  %1717 = vmatprep.mubr.msk.f32.mxu1 %vm257_vm1, %v2005_v19 }
  0x67   : > { %1769 = vmatprep.mubr.msk.f32.mxu0 %vm257_vm1, %v2033_v27 }
  0x69   : > { %1718 = vmatmul.mubr.msk.f32.gmra.mxu1 %vm257_vm1, %v2014_v21 }
  0x6a   : > { %1770 = vmatmul.mubr.msk.f32.gmra.mxu0 %vm257_vm1, %v2042_v29  ;;  %1720 = vmatprep.mubr.msk.f32.mxu1 %vm257_vm1, %v2019_v23 }
  0x6b   : > { %1772 = vmatprep.mubr.msk.f32.mxu0 %vm257_vm1, %v2047_v31 }
  0x6d   : > { %1721 = vmatmul.mubr.msk.f32.gmra.mxu1 %vm257_vm1, %v2028_v25 }
  0x6e   : > { %1773 = vmatmul.mubr.msk.f32.gmra.mxu0 %vm257_vm1, %v2056_v33  ;;  %1723 = vmatprep.mubr.msk.f32.mxu1 %vm257_vm1, %v2033_v27 }
  0x6f   : > { %1775 = vmatprep.mubr.msk.f32.mxu0 %vm257_vm1, %v2061_v35 }
  0x71   : > { %1724 = vmatmul.mubr.msk.f32.gmra.mxu1 %vm257_vm1, %v2042_v29 }
  0x72   : > { %1776 = vmatmul.mubr.msk.f32.gmra.mxu0 %vm257_vm1, %v2070_v37  ;;  %1726 = vmatprep.mubr.msk.f32.mxu1 %vm257_vm1, %v2047_v31 }
  0x73   : > { %1778 = vmatprep.mubr.msk.f32.mxu0 %vm257_vm1, %v847_v41 }
  0x75   : > { %1727 = vmatmul.mubr.msk.f32.gmra.mxu1 %vm257_vm1, %v2056_v33 }
  0x76   : > { %1779 = vmatmul.mubr.msk.f32.gmra.mxu0 %vm257_vm1, %v848_v42 }
  0xd9   : > { %v2183_v43 = vpop.f32.mrf.mxu1 }
  0xda   : > { %v1631_v44 = vpop.f32.mrf.mxu0 }
  0xdb   : > { %v2185_v45 = vpop.f32.mrf.mxu1 }
  0xdc   : > { %v424_v46 = vpop.f32.mrf.mxu0 }
  0xdd   : > { %v2187_v47 = vpop.f32.mrf.mxu1 }
  0xde   : > { %v1634_v48 = vpop.f32.mrf.mxu0 }
  0xdf   : > { %v2189_v49 = vpop.f32.mrf.mxu1 }
  0xe0   : > { %v434_v50 = vpop.f32.mrf.mxu0 }
  0xe1   : > { %v2191_v51 = vpop.f32.mrf.mxu1 }
  0xe2   : > { %v1637_v52 = vpop.f32.mrf.mxu0 }
  0xe3   : > { %v2193_v53 = vpop.f32.mrf.mxu1 }
  0xe4   : > { %v444_v54 = vpop.f32.mrf.mxu0 }
  0xe5   : > { %v2195_v55 = vpop.f32.mrf.mxu1 }
  0xe6   : > { %v1640_v56 = vpop.f32.mrf.mxu0 }
  0xe7   : > { %v2197_v57 = vpop.f32.mrf.mxu1 }
  0xe8   : > { %v454_v58 = vpop.f32.mrf.mxu0 }
  0xe9   : > { %v2199_v59 = vpop.f32.mrf.mxu1 }
  0xea   : > { %v2201_v60 = vpop.f32.mrf.mxu0 }
  0xeb   : > { %v2203_v61 = vpop.f32.mrf.mxu1 }
  0xec   : > { %v2205_v62 = vpop.f32.mrf.mxu0 }
  0xed   : > { %v2207_v63 = vpop.f32.mrf.mxu1 }
  0xee   : > { %v2209_v0 = vpop.f32.mrf.mxu0 }
  0xef   : > { %v2211_v1 = vpop.f32.mrf.mxu1 }
  0xf0   : > { %v2213_v2 = vpop.f32.mrf.mxu0 }
  0xf1   : > { %v2215_v3 = vpop.f32.mrf.mxu1 }
  0xf2   : > { %v2217_v4 = vpop.f32.mrf.mxu0 }
  0xf3   : > { %v2219_v5 = vpop.f32.mrf.mxu1 }
  0xf4   : > { %v2221_v6 = vpop.f32.mrf.mxu0 }
  0xf5   : > { %v2223_v7 = vpop.f32.mrf.mxu1 }
  0xf6   : > { %v2225_v8 = vpop.f32.mrf.mxu0 }
  0xf7   : > { %v2227_v9 = vpop.f32.mrf.mxu1 }
  0xf8   : > { %v2229_v10 = vpop.f32.mrf.mxu0 }
  0xf9   : > { %v1683_v11 = vpop.f32.mrf.mxu1 }
  0xfa   : > { %v664_v12 = vadd.f32 %v1683_v11, %v1631_v44  ;;  %v1735_v13 = vpop.f32.mrf.mxu0 }
  0xfb   : > { %v658_v14 = vpop.f32.mrf.mxu1 }
  0xfc   : > { %v659_v15 = vadd.f32 %v658_v14, %v424_v46  ;;  %v1017_v16 = vpop.f32.mrf.mxu0  ;;  %v1177_v17 = vadd.f32 %v1735_v13, %v664_v12 }
  0xfd   : > { %v1686_v18 = vpop.f32.mrf.mxu1 }
  0xfe   : > { %v1176_v19 = vadd.f32 %v1017_v16, %v659_v15  ;;  %v674_v20 = vadd.f32 %v1686_v18, %v1634_v48  ;;  %v1738_v21 = vpop.f32.mrf.mxu0  ;;  %v1250_v26 = vmul.f32 %v1177_v17, %v1177_v17 }
  0xff   : > { %v668_v22 = vpop.f32.mrf.mxu1 }
 0x100   : > { %v1249_v23 = vmul.f32 %v1176_v19, %v1176_v19  ;;  %v669_v24 = vadd.f32 %v668_v22, %v434_v50  ;;  %v1027_v25 = vpop.f32.mrf.mxu0  ;;  %v1209_v28 = vadd.f32 %v1177_v17, %v1176_v19  ;;  %v1179_v29 = vadd.f32 %v1738_v21, %v674_v20 }
 0x101   : > { %v1689_v27 = vpop.f32.mrf.mxu1 }
 0x102   : > { %v1178_v30 = vadd.f32 %v1027_v25, %v669_v24  ;;  %v684_v31 = vadd.f32 %v1689_v27, %v1637_v52  ;;  %v1741_v32 = vpop.f32.mrf.mxu0  ;;  %v1281_v34 = vadd.f32 %v1250_v26, %v1249_v23  ;;  %v1252_v41 = vmul.f32 %v1179_v29, %v1179_v29 }
 0x103   : > { %v678_v33 = vpop.f32.mrf.mxu1 }
 0x104   : > { %v1210_v35 = vadd.f32 %v1209_v28, %v1178_v30  ;;  %v1251_v36 = vmul.f32 %v1178_v30, %v1178_v30  ;;  %v679_v37 = vadd.f32 %v678_v33, %v444_v54  ;;  %v1037_v38 = vpop.f32.mrf.mxu0  ;;  %v1181_v39 = vadd.f32 %v1741_v32, %v684_v31 }
 0x105   : > { %v1692_v40 = vpop.f32.mrf.mxu1 }
 0x106   : > { %v1282_v42 = vadd.f32 %v1281_v34, %v1251_v36  ;;  %v1180_v44 = vadd.f32 %v1037_v38, %v679_v37  ;;  %v1211_v46 = vadd.f32 %v1210_v35, %v1179_v29  ;;  %v1744_v48 = vpop.f32.mrf.mxu0  ;;  %v694_v50 = vadd.f32 %v1692_v40, %v1640_v56 }
 0x107   : > { %v688_v11 = vpop.f32.mrf.mxu1  ;;  %v1254_v16 = vmul.f32 %v1181_v39, %v1181_v39 }
 0x108   : > { %v1212_v12 = vadd.f32 %v1211_v46, %v1180_v44  ;;  %v1253_v13 = vmul.f32 %v1180_v44, %v1180_v44  ;;  %v1283_v14 = vadd.f32 %v1282_v42, %v1252_v41  ;;  %v689_v52 = vadd.f32 %v688_v11, %v454_v58  ;;  %v1047_v15 = vpop.f32.mrf.mxu0 }
 0x109   : > { %v1183_v17 = vadd.f32 %v1744_v48, %v694_v50  ;;  %v1695_v18 = vpop.f32.mrf.mxu1 }
 0x10a   : > { %v1284_v19 = vadd.f32 %v1283_v14, %v1253_v13  ;;  %v1182_v54 = vadd.f32 %v1047_v15, %v689_v52  ;;  %v1213_v20 = vadd.f32 %v1212_v12, %v1181_v39  ;;  %v704_v21 = vadd.f32 %v1695_v18, %v2201_v60  ;;  %v1747_v22 = vpop.f32.mrf.mxu0 }
 0x10b   : > { %v698_v23 = vpop.f32.mrf.mxu1  ;;  %v1256_v29 = vmul.f32 %v1183_v17, %v1183_v17 }
 0x10c   : > { %v1214_v24 = vadd.f32 %v1213_v20, %v1182_v54  ;;  %v1255_v25 = vmul.f32 %v1182_v54, %v1182_v54  ;;  %v1285_v26 = vadd.f32 %v1284_v19, %v1254_v16  ;;  %v1057_v56 = vpop.f32.mrf.mxu0  ;;  %v699_v27 = vadd.f32 %v698_v23, %v2205_v62 }
 0x10d   : > { %v1698_v28 = vpop.f32.mrf.mxu1  ;;  %v1185_v30 = vadd.f32 %v1747_v22, %v704_v21 }
 0x10e   : > { %v1286_v58 = vadd.f32 %v1285_v26, %v1255_v25  ;;  %v1215_v31 = vadd.f32 %v1214_v24, %v1183_v17  ;;  %v1750_v32 = vpop.f32.mrf.mxu0  ;;  %v1184_v33 = vadd.f32 %v1057_v56, %v699_v27  ;;  %v714_v34 = vadd.f32 %v1698_v28, %v2209_v0 }
 0x10f   : > { %v708_v35 = vpop.f32.mrf.mxu1  ;;  %v1258_v41 = vmul.f32 %v1185_v30, %v1185_v30 }
 0x110   : > { %v1287_v36 = vadd.f32 %v1286_v58, %v1256_v29  ;;  %v709_v60 = vadd.f32 %v708_v35, %v2213_v2  ;;  %v1067_v37 = vpop.f32.mrf.mxu0  ;;  %v1216_v38 = vadd.f32 %v1215_v31, %v1184_v33  ;;  %v1257_v39 = vmul.f32 %v1184_v33, %v1184_v33 }
 0x111   : > { %v1701_v40 = vpop.f32.mrf.mxu1  ;;  %v1187_v46 = vadd.f32 %v1750_v32, %v714_v34 }
 0x112   : > { %v1186_v42 = vadd.f32 %v1067_v37, %v709_v60  ;;  %v1753_v62 = vpop.f32.mrf.mxu0  ;;  %v1288_v44 = vadd.f32 %v1287_v36, %v1257_v39  ;;  %v1217_v48 = vadd.f32 %v1216_v38, %v1185_v30  ;;  %v724_v50 = vadd.f32 %v1701_v40, %v2217_v4 }
 0x113   : > { %v718_v11 = vpop.f32.mrf.mxu1  ;;  %v1260_v18 = vmul.f32 %v1187_v46, %v1187_v46 }
 0x114   : > { %v1259_v12 = vmul.f32 %v1186_v42, %v1186_v42  ;;  %v719_v0 = vadd.f32 %v718_v11, %v2221_v6  ;;  %v1077_v13 = vpop.f32.mrf.mxu0  ;;  %v1218_v14 = vadd.f32 %v1217_v48, %v1186_v42  ;;  %v1289_v52 = vadd.f32 %v1288_v44, %v1258_v41 }
 0x115   : > { %v1704_v2 = vpop.f32.mrf.mxu1  ;;  %v1189_v54 = vadd.f32 %v1753_v62, %v724_v50 }
 0x116   : > { %v1188_v15 = vadd.f32 %v1077_v13, %v719_v0  ;;  %v734_v16 = vadd.f32 %v1704_v2, %v2225_v8  ;;  %v1756_v17 = vpop.f32.mrf.mxu0  ;;  %v1290_v19 = vadd.f32 %v1289_v52, %v1259_v12  ;;  %v1219_v20 = vadd.f32 %v1218_v14, %v1187_v46 }
 0x117   : > { %v728_v21 = vpop.f32.mrf.mxu1  ;;  %v1262_v28 = vmul.f32 %v1189_v54, %v1189_v54 }
 0x118   : > { %v1261_v22 = vmul.f32 %v1188_v15, %v1188_v15  ;;  %v729_v4 = vadd.f32 %v728_v21, %v2229_v10  ;;  %v1087_v23 = vpop.f32.mrf.mxu0  ;;  %v1220_v24 = vadd.f32 %v1219_v20, %v1188_v15  ;;  %v1291_v25 = vadd.f32 %v1290_v19, %v1260_v18 }
 0x119   : > { %v1707_v6 = vpop.f32.mrf.mxu1  ;;  %v1191_v26 = vadd.f32 %v1756_v17, %v734_v16 }
 0x11a   : > { %v1190_v56 = vadd.f32 %v1087_v23, %v729_v4  ;;  %v1759_v27 = vpop.f32.mrf.mxu0  ;;  %v1292_v29 = vadd.f32 %v1291_v25, %v1261_v22  ;;  %v1221_v58 = vadd.f32 %v1220_v24, %v1189_v54  ;;  %v744_v8 = vadd.f32 %v1707_v6, %v2183_v43 }
 0x11b   : > { %v738_v30 = vpop.f32.mrf.mxu1  ;;  %v1264_v36 = vmul.f32 %v1191_v26, %v1191_v26 }
 0x11c   : > { %v1263_v31 = vmul.f32 %v1190_v56, %v1190_v56  ;;  %v739_v32 = vadd.f32 %v738_v30, %v2185_v45  ;;  %v1097_v33 = vpop.f32.mrf.mxu0  ;;  %v1222_v34 = vadd.f32 %v1221_v58, %v1190_v56  ;;  %v1293_v35 = vadd.f32 %v1292_v29, %v1262_v28 }
 0x11d   : > { %v1710_v10 = vpop.f32.mrf.mxu1  ;;  %v1193_v39 = vadd.f32 %v1759_v27, %v744_v8 }
 0x11e   : > { %v1192_v60 = vadd.f32 %v1097_v33, %v739_v32  ;;  %v1762_v37 = vpop.f32.mrf.mxu0  ;;  %v1294_v38 = vadd.f32 %v1293_v35, %v1263_v31  ;;  %v1223_v40 = vadd.f32 %v1222_v34, %v1191_v26  ;;  %v754_v41 = vadd.f32 %v1710_v10, %v2187_v47 }
 0x11f   : > { %v748_v42 = vpop.f32.mrf.mxu1  ;;  %v1266_v0 = vmul.f32 %v1193_v39, %v1193_v39 }
 0x120   : > { %v1265_v62 = vmul.f32 %v1192_v60, %v1192_v60  ;;  %v749_v43 = vadd.f32 %v748_v42, %v2189_v49  ;;  %v1107_v44 = vpop.f32.mrf.mxu0  ;;  %v1224_v46 = vadd.f32 %v1223_v40, %v1192_v60  ;;  %v1295_v48 = vadd.f32 %v1294_v38, %v1264_v36 }
 0x121   : > { %v1713_v45 = vpop.f32.mrf.mxu1  ;;  %v1195_v14 = vadd.f32 %v1762_v37, %v754_v41 }
 0x122   : > { %v1194_v50 = vadd.f32 %v1107_v44, %v749_v43  ;;  %v764_v11 = vadd.f32 %v1713_v45, %v2191_v51  ;;  %v1765_v12 = vpop.f32.mrf.mxu0  ;;  %v1296_v13 = vadd.f32 %v1295_v48, %v1265_v62  ;;  %v1225_v52 = vadd.f32 %v1224_v46, %v1193_v39 }
 0x123   : > { %v758_v2 = vpop.f32.mrf.mxu1  ;;  %v1268_v21 = vmul.f32 %v1195_v14, %v1195_v14 }
 0x124   : > { %v1267_v15 = vmul.f32 %v1194_v50, %v1194_v50  ;;  %v759_v47 = vadd.f32 %v758_v2, %v2193_v53  ;;  %v1117_v16 = vpop.f32.mrf.mxu0  ;;  %v1226_v17 = vadd.f32 %v1225_v52, %v1194_v50  ;;  %v1297_v18 = vadd.f32 %v1296_v13, %v1266_v0 }
 0x125   : > { %v1716_v49 = vpop.f32.mrf.mxu1  ;;  %v1197_v19 = vadd.f32 %v1765_v12, %v764_v11 }
 0x126   : > { %v1196_v54 = vadd.f32 %v1117_v16, %v759_v47  ;;  %v1768_v20 = vpop.f32.mrf.mxu0  ;;  %v1298_v22 = vadd.f32 %v1297_v18, %v1267_v15  ;;  %v1227_v4 = vadd.f32 %v1226_v17, %v1195_v14  ;;  %v774_v51 = vadd.f32 %v1716_v49, %v2195_v55 }
 0x127   : > { %v768_v23 = vpop.f32.mrf.mxu1  ;;  %v1270_v27 = vmul.f32 %v1197_v19, %v1197_v19 }
 0x128   : > { %v1269_v24 = vmul.f32 %v1196_v54, %v1196_v54  ;;  %v769_v25 = vadd.f32 %v768_v23, %v2197_v57  ;;  %v1127_v6 = vpop.f32.mrf.mxu0  ;;  %v1228_v26 = vadd.f32 %v1227_v4, %v1196_v54  ;;  %v1299_v56 = vadd.f32 %v1298_v22, %v1268_v21 }
 0x129   : > { %v1719_v53 = vpop.f32.mrf.mxu1  ;;  %v1199_v8 = vadd.f32 %v1768_v20, %v774_v51 }
 0x12a   : > { %v1198_v28 = vadd.f32 %v1127_v6, %v769_v25  ;;  %v1771_v29 = vpop.f32.mrf.mxu0  ;;  %v1300_v58 = vadd.f32 %v1299_v56, %v1269_v24  ;;  %v1229_v30 = vadd.f32 %v1228_v26, %v1197_v19  ;;  %v784_v31 = vadd.f32 %v1719_v53, %v2199_v59 }
 0x12b   : > { %v778_v32 = vpop.f32.mrf.mxu1  ;;  %v1272_v38 = vmul.f32 %v1199_v8, %v1199_v8 }
 0x12c   : > { %v1271_v33 = vmul.f32 %v1198_v28, %v1198_v28  ;;  %v779_v55 = vadd.f32 %v778_v32, %v2203_v61  ;;  %v1137_v34 = vpop.f32.mrf.mxu0  ;;  %v1230_v35 = vadd.f32 %v1229_v30, %v1198_v28  ;;  %v1301_v10 = vadd.f32 %v1300_v58, %v1270_v27 }
 0x12d   : > { %v1722_v57 = vpop.f32.mrf.mxu1  ;;  %v1201_v40 = vadd.f32 %v1771_v29, %v784_v31 }
 0x12e   : > { %v1200_v36 = vadd.f32 %v1137_v34, %v779_v55  ;;  %v794_v60 = vadd.f32 %v1722_v57, %v2207_v63  ;;  %v1774_v37 = vpop.f32.mrf.mxu0  ;;  %v1302_v39 = vadd.f32 %v1301_v10, %v1271_v33  ;;  %v1231_v41 = vadd.f32 %v1230_v35, %v1199_v8  ;;  %v1208_v10 = vld [vmem:[#allocation2] sm:$0x1] }
 0x12f   : > { %v788_v42 = vpop.f32.mrf.mxu1  ;;  %v1274_v11 = vmul.f32 %v1201_v40, %v1201_v40 }
 0x130   : > { %v1273_v62 = vmul.f32 %v1200_v36, %v1200_v36  ;;  %v789_v59 = vadd.f32 %v788_v42, %v2211_v1  ;;  %v1147_v43 = vpop.f32.mrf.mxu0  ;;  %v1232_v44 = vadd.f32 %v1231_v41, %v1200_v36  ;;  %v1303_v46 = vadd.f32 %v1302_v39, %v1272_v38 }
 0x131   : > { %v1725_v61 = vpop.f32.mrf.mxu1  ;;  %v1203_v48 = vadd.f32 %v1774_v37, %v794_v60  ;;  %v1248_v60 = vld [vmem:[#allocation3] sm:$0x1] }
 0x132   : > { %v1202_v45 = vadd.f32 %v1147_v43, %v789_v59  ;;  %v1777_v50 = vpop.f32.mrf.mxu0  ;;  %v1304_v12 = vadd.f32 %v1303_v46, %v1273_v62  ;;  %v1233_v0 = vadd.f32 %v1232_v44, %v1201_v40  ;;  %v804_v63 = vadd.f32 %v1725_v61, %v2215_v3 }
 0x133   : > { %v798_v13 = vpop.f32.mrf.mxu1  ;;  %v1276_v16 = vmul.f32 %v1203_v48, %v1203_v48 }
 0x134   : > { %v1275_v14 = vmul.f32 %v1202_v45, %v1202_v45  ;;  %v799_v52 = vadd.f32 %v798_v13, %v2219_v5  ;;  %v1157_v2 = vpop.f32.mrf.mxu0  ;;  %v1234_v15 = vadd.f32 %v1233_v0, %v1202_v45  ;;  %v1305_v47 = vadd.f32 %v1304_v12, %v1274_v11 }
 0x135   : > { %v1728_v1 = vpop.f32.mrf.mxu1  ;;  %v1205_v19 = vadd.f32 %v1777_v50, %v804_v63 }
 0x136   : > { %v1204_v17 = vadd.f32 %v1157_v2, %v799_v52  ;;  %v1780_v18 = vpop.f32.mrf.mxu0  ;;  %v1306_v49 = vadd.f32 %v1305_v47, %v1275_v14  ;;  %v1235_v54 = vadd.f32 %v1234_v15, %v1203_v48  ;;  %v814_v20 = vadd.f32 %v1728_v1, %v2223_v7 }
 0x137   : > { %v808_v21 = vpop.f32.mrf.mxu1  ;;  %v1278_v24 = vmul.f32 %v1205_v19, %v1205_v19 }
 0x138   : > { %v1277_v22 = vmul.f32 %v1204_v17, %v1204_v17  ;;  %v809_v3 = vadd.f32 %v808_v21, %v2227_v9  ;;  %v1236_v4 = vadd.f32 %v1235_v54, %v1204_v17  ;;  %v1307_v51 = vadd.f32 %v1306_v49, %v1276_v16  ;;  %v1167_v23 = vpop.f32.mrf.mxu0 }
 0x139   : > { %v1207_v6 = vadd.f32 %v1780_v18, %v814_v20 }
 0x13a   : > { %v1206_v5 = vadd.f32 %v1167_v23, %v809_v3  ;;  %v1308_v25 = vadd.f32 %v1307_v51, %v1277_v22  ;;  %v1237_v26 = vadd.f32 %v1236_v4, %v1205_v19 }
 0x13b   : > { %v1280_v28 = vmul.f32 %v1207_v6, %v1207_v6 }
 0x13c   : > { %v1279_v56 = vmul.f32 %v1206_v5, %v1206_v5  ;;  %v1238_v53 = vadd.f32 %v1237_v26, %v1206_v5  ;;  %v1309_v27 = vadd.f32 %v1308_v25, %v1278_v24 }
 0x13e   : > { %v1239_v29 = vadd.f32 %v1238_v53, %v1207_v6  ;;  %v1310_v58 = vadd.f32 %v1309_v27, %v1279_v56 }
 0x140   : > { %v1240_v8 = vrot.slane %v1239_v29, 4  ;;  %v1311_v7 = vadd.f32 %v1310_v58, %v1280_v28 }
 0x142   : > { %v1241_v30 = vadd.f32 %v1240_v8, %v1239_v29  ;;  %v1312_v31 = vrot.slane %v1311_v7, 4 }
 0x144   : > { %v1242_v32 = vrot.slane %v1241_v30, 2  ;;  %v1313_v9 = vadd.f32 %v1312_v31, %v1311_v7 }
 0x146   : > { %v1243_v33 = vadd.f32 %v1242_v32, %v1241_v30  ;;  %v1314_v55 = vrot.slane %v1313_v9, 2 }
 0x148   : > { %v1244_v34 = vrot.slane %v1243_v33, 1  ;;  %v1315_v35 = vadd.f32 %v1314_v55, %v1313_v9 }
 0x14a   : > { %v1245_v57 = vadd.f32 %v1244_v34, %v1243_v33  ;;  %v1316_v36 = vrot.slane %v1315_v35, 1 }
 0x14c   : > { %v1246_v37 = vadd.f32 %v1245_v57, %v1208_v10  ;;  %v1317_v38 = vadd.f32 %v1316_v36, %v1315_v35  ;;  %1323 = sbr.rel (%p1516_p5) target bundleno = 371 (0x173), region = 44 }
 0x14e   : > { %1247 = vst [vmem:[#allocation2] sm:$0x1] %v1246_v37  ;;  %v1318_v39 = vadd.f32 %v1317_v38, %v1248_v60 }
 0x150   : > { %1319 = vst [vmem:[#allocation3] sm:$0x1] %v1318_v39 }
 0x151   : > { %v1332_v46 = vld [vmem:[%s2290_s2] sm:$0x1] }
 0x152   : > { %v1334_v45 = vld [vmem:[%s2291_s3] sm:$0x1] }
 0x155   : > { %v1324_v40 = vld [vmem:[#allocation2] sm:$0x1] }
 0x156   : > { %v1325_v42 = vmul.f32 0.001953125, %v1324_v40 }
 0x157   : > { %v1326_v41 = vld [vmem:[#allocation3] sm:$0x1] }
 0x158   : > { %v1327_v62 = vmul.f32 0.001953125, %v1326_v41  ;;  %v1328_v59 = vmul.f32 %v1325_v42, %v1325_v42 }
 0x15a   : > { %v1329_v43 = vsub.f32 %v1327_v62, %v1328_v59 }
 0x15c   : > { %v1330_v44 = vadd.f32 1e-05, %v1329_v43 }
 0x15e   : > { %1808 = vrsqrt.f32 %v1330_v44 }
 0x16b   : > { %v1809_v61 = vpop.eup %1808 }
 0x16c   : > { %v1333_v48 = vmul.f32 %v1809_v61, %v1332_v46 }
 0x16e   : > { %1337 = vst [vmem:[#allocation4] sm:$0x1] %v1333_v48  ;;  %v1335_v50 = vmul.f32 %v1333_v48, %v1325_v42 }
 0x170   : > { %v1336_v11 = vsub.f32 %v1334_v45, %v1335_v50 }
 0x172   : > { %1338 = vst [vmem:[#allocation6] sm:$0x1] %v1336_v11 }
 0x173 PF: > { %p1793_p6 = scmp.eq.s32.totalorder %s1913_s19, 1  ;;  %s1875_s16 = smov [#allocation4]  }
 0x174   : > { %s1346_s17 = sshll.u32 %s1875_s16, 4  ;;  %s1876_s20 = smov [#allocation6]   ;;  %s1347_s17 = int_to_ptr.vmem [resolvable:$true] %s1346_s17 }
 0x175   : > { %s1357_s21 = sshll.u32 %s1876_s20, 4  ;;  %s1810_s22 = scalar_lea.vmem %s1347_s17, 16  ;;  %s1358_s21 = int_to_ptr.vmem [resolvable:$true] %s1357_s21 }
 0x176   : > { %p1811_p7 = scmp.ne.s32.totalorder %s1347_s17, %s1810_s22  ;;  %s1816_s23 = scalar_lea.vmem %s1347_s17, 32 }
 0x177   : > { %p1817_p10 = scmp.lt.s32.totalorder %s1347_s17, %s1347_s17  ;;  %p1818_p11 = scmp.lt.s32.totalorder %s1816_s23, %s1810_s22 }
 0x178   : > { %p1812_p8 = pnand %p1811_p7, %p1793_p6 }
 0x179   : > { %p1819_p12 = por %p1818_p11, %p1817_p10 }
 0x17a   : > { %p1813_p9 = pneg %p1812_p8 }
 0x17c   : > { %p1820_p13 = pnand %p1819_p12, %p1813_p9 }
 0x17e   : > { %1823 = shalt.err (!%p1820_p13)
}
 0x17f   : > { %1786 = dma.vmem_to_hbm [thread:$0]  (%p1793_p6), %s1347_s17, 16, %s2292_s4, [#allocation5]  }
 0x180   : > { %s1834_s26 = scalar_lea.vmem %s1358_s21, 16  ;;  %s1840_s27 = scalar_lea.vmem %s1358_s21, 32 }
 0x181   : > { %p1835_p0 = scmp.ne.s32.totalorder %s1358_s21, %s1834_s26  ;;  %p1841_p3 = scmp.lt.s32.totalorder %s1358_s21, %s1358_s21 }
 0x182   : > { %p1842_p4 = scmp.lt.s32.totalorder %s1840_s27, %s1834_s26 }
 0x183   : > { %p1836_p1 = pnand %p1835_p0, %p1793_p6 }
 0x184   : > { %p1843_p5 = por %p1842_p4, %p1841_p3 }
 0x185   : > { %p1837_p2 = pneg %p1836_p1 }
 0x187   : > { %p1844_p7 = pnand %p1843_p5, %p1837_p2 }
 0x189   : > { %1847 = shalt.err (!%p1844_p7)
}
 0x18a   : > { %1788 = dma.vmem_to_hbm [thread:$0]  (%p1793_p6), %s1358_s21, 16, %s2293_s5, [#allocation7]  }
 0x18b   : > { %1863 = dma.done.wait (%p1793_p6), [#allocation5], 16  }
 0x18c   : > { %1865 = vsyncadd (%p1793_p6), [#allocation5], 4294967280 }
 0x18d   : > { %1867 = dma.done.wait (%p1793_p6), [#allocation7], 16  }
 0x18e   : > { %1869 = vsyncadd (%p1793_p6), [#allocation7], 4294967280 }
 0x18f PF: > { %s18_s18 = sadd.s32 1, %s1872_s18  }
 0x190   : > { %p15_p8 = scmp.ge.s32.totalorder %s18_s18, 4  }
 0x192   :  { %17 = sbr.rel (!%p15_p8) target bundleno = 2 (0x2), region = 81 }
 0x197   :  { %1374 = vsyncpa [#allocation5], 1 }
 0x198   :  { %1376 = vsyncpa [#allocation5 + $0x1], 1 }
 0x199   :  { %1377 = vsyncpa [#allocation7], 1 }

</bundles_post_ra>
